<compile_context>
chip_gen: v7x
topology: tpu7x:2x2x1
jax: 0.10.0
libtpu: 0.0.40
codegen_flags: <defaults>
</compile_context>

<pallas_src>
import numpy as np

import jax
import jax.numpy as jnp
from jax.experimental import pallas as pl
from jax.experimental.pallas import tpu as pltpu


def _round_up(v, m):
    return ((v + m - 1) // m) * m


def lstm_kernel(x_ref, wx_ref, wh_ref, b_ref, out_ref, h_scr, c_scr, xg_scr):
    """One grid step == `Tc` timesteps of the recurrence for one batch block."""
    Tc, Bb, I = x_ref.shape
    Lp = h_scr.shape[-1]
    G = 4 * Lp

    # h, c default to zeros (h=None, c=None in the PyTorch forward); reset at
    # the first time-chunk of every batch block (chunk axis is the inner one).
    @pl.when(pl.program_id(1) == 0)
    def _():
        h_scr[...] = jnp.zeros_like(h_scr)
        c_scr[...] = jnp.zeros_like(c_scr)

    # ---- Hoisted input projection: one big matmul per chunk ---------------
    # (Tc*Bb, I) @ (I, 4*Lp) + bias -> f32 scratch, consumed row-block per step.
    x_flat = x_ref[...].reshape(Tc * Bb, I)
    xg_scr[...] = (
        jnp.dot(x_flat, wx_ref[...], preferred_element_type=jnp.float32)
        + b_ref[...])

    # Hoisted out of the time loop (JAX does not CSE broadcast_in_dim).
    if Lp % 128 != 0:
        lane = jax.lax.broadcasted_iota(jnp.int32, (Bb, G), 1)
        chat_mask = lane >= 3 * Lp          # gate order [f, i, o, c_hat]

    def step(t, carry):
        h, c = carry                        # f32 (Bb, Lp), kept in vregs

        # Serial part of the recurrence: only h @ Wh (K = Lp), plus the
        # precomputed x-projection row block.
        row = pl.multiple_of(t * Bb, 8)     # Bb is a multiple of 8
        gates = xg_scr[pl.ds(row, Bb), :] + jnp.dot(
            h.astype(wh_ref.dtype), wh_ref[...],
            preferred_element_type=jnp.float32)          # (Bb, 4*Lp) f32

        if Lp % 128 == 0:
            # Lane-aligned per-gate slabs: sigmoid over [f|i|o], tanh only on
            # c_hat -> ~half the EUP work vs the whole-vreg select form.
            sig = jax.nn.sigmoid(gates[:, 0:3 * Lp])
            c_hat = jnp.tanh(gates[:, 3 * Lp:])
            f_g = sig[:, 0:Lp]
            i_g = sig[:, Lp:2 * Lp]
            o_g = sig[:, 2 * Lp:3 * Lp]
        else:
            # Small Lp: 128-lane slices would be misaligned; whole-vreg form.
            act = jnp.where(chat_mask, jnp.tanh(gates), jax.nn.sigmoid(gates))
            f_g = act[:, 0:Lp]
            i_g = act[:, Lp:2 * Lp]
            o_g = act[:, 2 * Lp:3 * Lp]
            c_hat = act[:, 3 * Lp:]

        new_c = f_g * c + i_g * c_hat
        new_h = o_g * jnp.tanh(new_c)

        out_ref[t] = new_h.astype(out_ref.dtype)          # store into VMEM chunk
        return (new_h, new_c)

    # Unroll scaled with gate width so live f32 gate vregs don't spill.
    unroll = max(1, min(Tc, 8, 512 // Lp))
    hT, cT = jax.lax.fori_loop(0, Tc, step, (h_scr[...], c_scr[...]),
                               unroll=unroll)
    h_scr[...] = hT
    c_scr[...] = cT


def lstm_forward(x, W_f, b_f, W_i, b_i, W_c, b_c, W_o, b_o, latent_size,
                 mxu_dtype=jnp.bfloat16, out_dtype=jnp.bfloat16,
                 t_chunk=256, n_batch_blocks=1):
    """x: (T, B, input_size); W_*: (L, L+I) PyTorch nn.Linear layout; b_*: (L,).

    n_batch_blocks: number of independent batch shards (leading 'parallel'
    grid axis).  Use 2 on v7x to occupy both TensorCores; 1 on single-core
    chips (v5e/v6e) so the serial recurrent step count is not multiplied.
    NOTE: h is cast to `mxu_dtype` each step before the recurrent matmul, so
    with bf16 the rounding error compounds over long sequences; pass
    mxu_dtype=jnp.float32 when full recurrent precision is needed.
    """
    T, B, I = x.shape
    L = latent_size

    Lp = _round_up(L, 32)                         # 4*Lp is a multiple of 128 lanes
    G = 4 * Lp
    Bb = _round_up(pl.cdiv(B, n_batch_blocks), 8)  # per-shard batch rows (f32 sublane granule)
    Bp = Bb * n_batch_blocks

    mxu_bytes = np.dtype(mxu_dtype).itemsize
    out_bytes = np.dtype(out_dtype).itemsize

    # ---- t_chunk vs VMEM budget (v7x: 64 MiB physical, 32 MiB default scoped)
    def vmem_est(tc):
        w = (I * G + Lp * G) * mxu_bytes * 2 + G * 4 * 2      # double-buffered weights + bias
        xb = tc * Bb * I * mxu_bytes * 2                      # x chunk (x2 pipeline)
        ob = tc * Bb * Lp * out_bytes * 2                     # out chunk (x2 pipeline)
        xg = tc * Bb * G * 4 * 2                              # xg scratch + matmul-result headroom
        hc = 2 * Bb * Lp * 4
        return w + xb + ob + xg + hc

    VMEM_BUDGET = 40 * 1024 * 1024
    tc = max(1, min(t_chunk, T))
    while vmem_est(tc) > VMEM_BUDGET and tc > 8:
        tc = max(8, tc // 2)
    Tp = _round_up(T, tc)
    n_chunks = Tp // tc

    vmem_limit = int(min(110 * 1024 * 1024,
                         max(vmem_est(tc) * 3 // 2 + (4 << 20), 16 << 20)))

    # ---- Split each PyTorch Linear into recurrent (h) and input (x) parts ---
    # Gate order along the 4*Lp axis: [f, i, o, c_hat].  Padded rows/cols are
    # zero, so padded gate lanes stay inert (c/h start at 0).
    Wh = jnp.zeros((Lp, G), jnp.float32)
    Wx = jnp.zeros((I, G), jnp.float32)
    bias = jnp.zeros((1, G), jnp.float32)
    for g, (Wg, bg) in enumerate([(W_f, b_f), (W_i, b_i), (W_o, b_o), (W_c, b_c)]):
        Wg_t = Wg.T                                            # (L+I, L)
        Wh = Wh.at[0:L, g * Lp:g * Lp + L].set(Wg_t[:L])       # h part
        Wx = Wx.at[:, g * Lp:g * Lp + L].set(Wg_t[L:])         # x part
        bias = bias.at[0, g * Lp:g * Lp + L].set(bg)
    Wh = Wh.astype(mxu_dtype)
    Wx = Wx.astype(mxu_dtype)

    xp = jnp.zeros((Tp, Bp, I), mxu_dtype)
    xp = xp.at[:T, :B, :].set(x.astype(mxu_dtype))

    cost = pl.CostEstimate(
        flops=2 * Tp * Bp * G * (Lp + I),
        transcendentals=5 * Tp * Bp * Lp,
        bytes_accessed=(Tp * Bp * I * mxu_bytes
                        + Tp * Bp * Lp * out_bytes
                        + (Wh.size + Wx.size) * mxu_bytes + bias.size * 4),
    )

    out = pl.pallas_call(
        lstm_kernel,
        out_shape=jax.ShapeDtypeStruct((Tp, Bp, Lp), out_dtype),
        grid_spec=pltpu.PrefetchScalarGridSpec(
            num_scalar_prefetch=0,
            grid=(n_batch_blocks, n_chunks),
            in_specs=[
                pl.BlockSpec((tc, Bb, I), lambda b, g: (g, b, 0)),   # x chunk
                pl.BlockSpec((I, G), lambda b, g: (0, 0)),           # Wx (resident)
                pl.BlockSpec((Lp, G), lambda b, g: (0, 0)),          # Wh (resident)
                pl.BlockSpec((1, G), lambda b, g: (0, 0)),           # bias
            ],
            out_specs=pl.BlockSpec((tc, Bb, Lp), lambda b, g: (g, b, 0)),
            scratch_shapes=[
                pltpu.VMEM((Bb, Lp), jnp.float32),         # h carry (f32 across chunks)
                pltpu.VMEM((Bb, Lp), jnp.float32),         # c carry
                pltpu.VMEM((tc * Bb, G), jnp.float32),     # hoisted x-projection
            ],
        ),
        compiler_params=pltpu.CompilerParams(
            # batch shards are independent (both TCs on v7x); the time-chunk
            # axis carries the recurrence and must stay sequential.
            dimension_semantics=("parallel", "arbitrary"),
            vmem_limit_bytes=vmem_limit,
        ),
        cost_estimate=cost,
    )(xp, Wx, Wh, bias)

    return out[:T, :B, :L]


def lstm_reference(x, W_f, b_f, W_i, b_i, W_c, b_c, W_o, b_o, latent_size):
    """Pure-JAX reference mirroring the PyTorch forward()."""
    T, B, I = x.shape
    L = latent_size
    h = jnp.zeros((B, L), jnp.float32)
    c = jnp.zeros((B, L), jnp.float32)

    def step(carry, x_t):
        h, c = carry
        hx = jnp.concatenate([h, x_t], axis=-1)
        f = jax.nn.sigmoid(hx @ W_f.T + b_f)
        i = jax.nn.sigmoid(hx @ W_i.T + b_i)
        c_hat = jnp.tanh(hx @ W_c.T + b_c)
        o = jax.nn.sigmoid(hx @ W_o.T + b_o)
        new_c = f * c + i * c_hat
        new_h = o * jnp.tanh(new_c)
        return (new_h, new_c), new_h

    _, hs = jax.lax.scan(step, (h, c), x)
    return hs


if __name__ == "__main__":
    T, B = 8, 2
    input_size, latent_size, output_size = 16, 32, 10

    key = jax.random.PRNGKey(0)
    keys = jax.random.split(key, 10)

    fan_in = latent_size + input_size
    bound = 1.0 / (fan_in ** 0.5)

    def init_linear(kw, kb):
        W = jax.random.uniform(kw, (latent_size, fan_in), jnp.float32, -bound, bound)
        b = jax.random.uniform(kb, (latent_size,), jnp.float32, -bound, bound)
        return W, b

    W_f, b_f = init_linear(keys[0], keys[1])
    W_i, b_i = init_linear(keys[2], keys[3])
    W_c, b_c = init_linear(keys[4], keys[5])
    W_o, b_o = init_linear(keys[6], keys[7])

    x = jax.random.normal(keys[8], (T, B, input_size), jnp.float32)

    ref = lstm_reference(x, W_f, b_f, W_i, b_i, W_c, b_c, W_o, b_o, latent_size)

    # f32 MXU + f32 output: exact check against the reference.
    out_f32 = lstm_forward(x, W_f, b_f, W_i, b_i, W_c, b_c, W_o, b_o,
                           latent_size, mxu_dtype=jnp.float32,
                           out_dtype=jnp.float32)
    out_f32 = jax.block_until_ready(out_f32)
    assert out_f32.shape == (T, B, latent_size)
    assert jnp.allclose(out_f32, ref, atol=1e-5, rtol=1e-5)

    # Batch-sharded path (v7x 2-TensorCore layout), f32: exact check.
    out_split = lstm_forward(x, W_f, b_f, W_i, b_i, W_c, b_c, W_o, b_o,
                             latent_size, mxu_dtype=jnp.float32,
                             out_dtype=jnp.float32, n_batch_blocks=2)
    out_split = jax.block_until_ready(out_split)
    assert out_split.shape == (T, B, latent_size)
    assert jnp.allclose(out_split, ref, atol=1e-5, rtol=1e-5)

    # Default path: bf16 MXU operands + bf16 output writeback, f32 carries.
    out_bf16 = lstm_forward(x, W_f, b_f, W_i, b_i, W_c, b_c, W_o, b_o,
                            latent_size)
    out_bf16 = jax.block_until_ready(out_bf16)
    assert out_bf16.shape == (T, B, latent_size)
    assert jnp.allclose(out_bf16.astype(jnp.float32), ref, atol=5e-2, rtol=5e-2)

    print("KERNEL_OK")
</pallas_src>

<mosaic_0001>
module attributes {stable_mosaic.version = 11 : i64} {
  func.func @lstm_kernel(%arg0: i32, %arg1: i32, %arg2: memref<8x8x16xf32, #tpu.memory_space<vmem>>, %arg3: memref<16x128xf32, #tpu.memory_space<vmem>>, %arg4: memref<32x128xf32, #tpu.memory_space<vmem>>, %arg5: memref<1x128xf32, #tpu.memory_space<vmem>>, %arg6: memref<8x8x32xf32, #tpu.memory_space<vmem>>, %arg7: memref<8x32xf32, #tpu.memory_space<vmem>>, %arg8: memref<8x32xf32, #tpu.memory_space<vmem>>, %arg9: memref<64x128xf32, #tpu.memory_space<vmem>>) attributes {dimension_semantics = [#tpu.dimension_semantics<parallel>, #tpu.dimension_semantics<arbitrary>], iteration_bounds = array<i64: 1, 1>, scalar_prefetch = 0 : i64, scratch_operands = 3 : i64, tpu.core_type = #tpu.core_type<tc>, window_params = [{transform_indices = @transform_0, window_bounds = array<i64: 8, 8, 16>}, {pipeline_mode = #tpu.pipeline_mode<synchronous>, transform_indices = @transform_1, window_bounds = array<i64: 16, 128>}, {pipeline_mode = #tpu.pipeline_mode<synchronous>, transform_indices = @transform_2, window_bounds = array<i64: 32, 128>}, {pipeline_mode = #tpu.pipeline_mode<synchronous>, transform_indices = @transform_3, window_bounds = array<i64: 1, 128>}, {transform_indices = @transform_4, window_bounds = array<i64: 8, 8, 32>}]} {
    %c0_i32 = arith.constant 0 : i32
    %0 = arith.cmpi eq, %arg1, %c0_i32 : i32
    %1 = arith.extui %0 : i1 to i32
    %c0_i32_0 = arith.constant 0 : i32
    %2 = arith.cmpi ne, %1, %c0_i32_0 : i32
    scf.if %2 {
      %cst_82 = arith.constant 0.000000e+00 : f32
      %234 = vector.broadcast %cst_82 : f32 to vector<8x32xf32>
      %c0_83 = arith.constant 0 : index
      %c0_84 = arith.constant 0 : index
      %235 = vector.load %arg7[%c0_83, %c0_84] : memref<8x32xf32, #tpu.memory_space<vmem>>, vector<8x32xf32>
      tpu.vector_store %arg7[%c0_83, %c0_84], %234 {strides = array<i32>} : memref<8x32xf32, #tpu.memory_space<vmem>>, vector<8x32xf32>,
      %cst_85 = arith.constant 0.000000e+00 : f32
      %236 = vector.broadcast %cst_85 : f32 to vector<8x32xf32>
      %c0_86 = arith.constant 0 : index
      %c0_87 = arith.constant 0 : index
      %237 = vector.load %arg8[%c0_86, %c0_87] : memref<8x32xf32, #tpu.memory_space<vmem>>, vector<8x32xf32>
      tpu.vector_store %arg8[%c0_86, %c0_87], %236 {strides = array<i32>} : memref<8x32xf32, #tpu.memory_space<vmem>>, vector<8x32xf32>,
    } else {
    }
    %c0 = arith.constant 0 : index
    %c0_1 = arith.constant 0 : index
    %c0_2 = arith.constant 0 : index
    %3 = vector.load %arg2[%c0, %c0_1, %c0_2] : memref<8x8x16xf32, #tpu.memory_space<vmem>>, vector<8x8x16xf32>
    %4 = vector.shape_cast %3 : vector<8x8x16xf32> to vector<64x16xf32>
    %c0_3 = arith.constant 0 : index
    %c0_4 = arith.constant 0 : index
    %5 = vector.load %arg3[%c0_3, %c0_4] : memref<16x128xf32, #tpu.memory_space<vmem>>, vector<16x128xf32>
    %cst = arith.constant dense<0.000000e+00> : vector<64x128xf32>
    %6 = tpu.matmul %4, %5, %cst {dimension_numbers = #tpu.dot_dimension_numbers<[1], [0], [0], [1], [0, 0, 1, 1], [], []>} : vector<64x16xf32>, vector<16x128xf32>, vector<64x128xf32> -> vector<64x128xf32>
    %c0_5 = arith.constant 0 : index
    %c0_6 = arith.constant 0 : index
    %7 = vector.load %arg5[%c0_5, %c0_6] : memref<1x128xf32, #tpu.memory_space<vmem>>, vector<1x128xf32>
    %8 = vector.broadcast %7 : vector<1x128xf32> to vector<64x128xf32>
    %9 = arith.addf %6, %8 : vector<64x128xf32>
    %c0_7 = arith.constant 0 : index
    %c0_8 = arith.constant 0 : index
    %10 = vector.load %arg9[%c0_7, %c0_8] : memref<64x128xf32, #tpu.memory_space<vmem>>, vector<64x128xf32>
    tpu.vector_store %arg9[%c0_7, %c0_8], %9 {strides = array<i32>} : memref<64x128xf32, #tpu.memory_space<vmem>>, vector<64x128xf32>,
    %11 = tpu.iota {dimensions = array<i32: 1>} : vector<8x128xi32>
    %c96_i32 = arith.constant 96 : i32
    %12 = vector.broadcast %c96_i32 : i32 to vector<8x128xi32>
    %13 = arith.cmpi sge, %11, %12 : vector<8x128xi32>
    %c0_9 = arith.constant 0 : index
    %c0_10 = arith.constant 0 : index
    %14 = vector.load %arg7[%c0_9, %c0_10] : memref<8x32xf32, #tpu.memory_space<vmem>>, vector<8x32xf32>
    %c0_11 = arith.constant 0 : index
    %c0_12 = arith.constant 0 : index
    %15 = vector.load %arg8[%c0_11, %c0_12] : memref<8x32xf32, #tpu.memory_space<vmem>>, vector<8x32xf32>
    %c0_i32_13 = arith.constant 0 : i32
    %c8_i32 = arith.constant 8 : i32
    %16 = arith.muli %c0_i32_13, %c8_i32 : i32
    %17 = tpu.assume_multiple %16, 8 : i32
    %18 = arith.index_cast %17 : i32 to index
    %c0_14 = arith.constant 0 : index
    %19 = vector.load %arg9[%18, %c0_14] : memref<64x128xf32, #tpu.memory_space<vmem>>, vector<8x128xf32>
    %c0_15 = arith.constant 0 : index
    %c0_16 = arith.constant 0 : index
    %20 = vector.load %arg4[%c0_15, %c0_16] : memref<32x128xf32, #tpu.memory_space<vmem>>, vector<32x128xf32>
    %cst_17 = arith.constant dense<0.000000e+00> : vector<8x128xf32>
    %21 = tpu.matmul %14, %20, %cst_17 {dimension_numbers = #tpu.dot_dimension_numbers<[1], [0], [0], [1], [0, 0, 1, 1], [], []>} : vector<8x32xf32>, vector<32x128xf32>, vector<8x128xf32> -> vector<8x128xf32>
    %22 = arith.addf %19, %21 : vector<8x128xf32>
    %23 = math.tanh %22 : vector<8x128xf32>
    %24 = arith.negf %22 : vector<8x128xf32>
    %25 = math.exp %24 : vector<8x128xf32>
    %cst_18 = arith.constant 1.000000e+00 : f32
    %26 = vector.broadcast %cst_18 : f32 to vector<8x128xf32>
    %27 = arith.addf %26, %25 : vector<8x128xf32>
    %28 = arith.divf %26, %27 : vector<8x128xf32>
    %29 = arith.select %13, %23, %28 : vector<8x128xi1>, vector<8x128xf32>
    %30 = vector.extract_strided_slice %29 {offsets = [0, 0], sizes = [8, 32], strides = [1, 1]} : vector<8x128xf32> to vector<8x32xf32>
    %31 = vector.extract_strided_slice %29 {offsets = [0, 32], sizes = [8, 32], strides = [1, 1]} : vector<8x128xf32> to vector<8x32xf32>
    %32 = vector.extract_strided_slice %29 {offsets = [0, 64], sizes = [8, 32], strides = [1, 1]} : vector<8x128xf32> to vector<8x32xf32>
    %33 = vector.extract_strided_slice %29 {offsets = [0, 96], sizes = [8, 32], strides = [1, 1]} : vector<8x128xf32> to vector<8x32xf32>
    %34 = arith.mulf %30, %15 : vector<8x32xf32>
    %35 = arith.mulf %31, %33 : vector<8x32xf32>
    %36 = arith.addf %34, %35 : vector<8x32xf32>
    %37 = math.tanh %36 : vector<8x32xf32>
    %38 = arith.mulf %32, %37 : vector<8x32xf32>
    %39 = arith.index_cast %c0_i32_13 : i32 to index
    %c0_19 = arith.constant 0 : index
    %c0_20 = arith.constant 0 : index
    %40 = vector.load %arg6[%39, %c0_19, %c0_20] : memref<8x8x32xf32, #tpu.memory_space<vmem>>, vector<1x8x32xf32>
    %41 = vector.shape_cast %40 : vector<1x8x32xf32> to vector<8x32xf32>
    %42 = vector.shape_cast %38 : vector<8x32xf32> to vector<1x8x32xf32>
    tpu.vector_store %arg6[%39, %c0_19, %c0_20], %42 {strides = array<i32>} : memref<8x8x32xf32, #tpu.memory_space<vmem>>, vector<1x8x32xf32>,
    %c1_i32 = arith.constant 1 : i32
    %c8_i32_21 = arith.constant 8 : i32
    %43 = arith.muli %c1_i32, %c8_i32_21 : i32
    %44 = tpu.assume_multiple %43, 8 : i32
    %45 = arith.index_cast %44 : i32 to index
    %c0_22 = arith.constant 0 : index
    %46 = vector.load %arg9[%45, %c0_22] : memref<64x128xf32, #tpu.memory_space<vmem>>, vector<8x128xf32>
    %c0_23 = arith.constant 0 : index
    %c0_24 = arith.constant 0 : index
    %47 = vector.load %arg4[%c0_23, %c0_24] : memref<32x128xf32, #tpu.memory_space<vmem>>, vector<32x128xf32>
    %cst_25 = arith.constant dense<0.000000e+00> : vector<8x128xf32>
    %48 = tpu.matmul %38, %47, %cst_25 {dimension_numbers = #tpu.dot_dimension_numbers<[1], [0], [0], [1], [0, 0, 1, 1], [], []>} : vector<8x32xf32>, vector<32x128xf32>, vector<8x128xf32> -> vector<8x128xf32>
    %49 = arith.addf %46, %48 : vector<8x128xf32>
    %50 = math.tanh %49 : vector<8x128xf32>
    %51 = arith.negf %49 : vector<8x128xf32>
    %52 = math.exp %51 : vector<8x128xf32>
    %cst_26 = arith.constant 1.000000e+00 : f32
    %53 = vector.broadcast %cst_26 : f32 to vector<8x128xf32>
    %54 = arith.addf %53, %52 : vector<8x128xf32>
    %55 = arith.divf %53, %54 : vector<8x128xf32>
    %56 = arith.select %13, %50, %55 : vector<8x128xi1>, vector<8x128xf32>
    %57 = vector.extract_strided_slice %56 {offsets = [0, 0], sizes = [8, 32], strides = [1, 1]} : vector<8x128xf32> to vector<8x32xf32>
    %58 = vector.extract_strided_slice %56 {offsets = [0, 32], sizes = [8, 32], strides = [1, 1]} : vector<8x128xf32> to vector<8x32xf32>
    %59 = vector.extract_strided_slice %56 {offsets = [0, 64], sizes = [8, 32], strides = [1, 1]} : vector<8x128xf32> to vector<8x32xf32>
    %60 = vector.extract_strided_slice %56 {offsets = [0, 96], sizes = [8, 32], strides = [1, 1]} : vector<8x128xf32> to vector<8x32xf32>
    %61 = arith.mulf %57, %36 : vector<8x32xf32>
    %62 = arith.mulf %58, %60 : vector<8x32xf32>
    %63 = arith.addf %61, %62 : vector<8x32xf32>
    %64 = math.tanh %63 : vector<8x32xf32>
    %65 = arith.mulf %59, %64 : vector<8x32xf32>
    %66 = arith.index_cast %c1_i32 : i32 to index
    %c0_27 = arith.constant 0 : index
    %c0_28 = arith.constant 0 : index
    %67 = vector.load %arg6[%66, %c0_27, %c0_28] : memref<8x8x32xf32, #tpu.memory_space<vmem>>, vector<1x8x32xf32>
    %68 = vector.shape_cast %67 : vector<1x8x32xf32> to vector<8x32xf32>
    %69 = vector.shape_cast %65 : vector<8x32xf32> to vector<1x8x32xf32>
    tpu.vector_store %arg6[%66, %c0_27, %c0_28], %69 {strides = array<i32>} : memref<8x8x32xf32, #tpu.memory_space<vmem>>, vector<1x8x32xf32>,
    %c2_i32 = arith.constant 2 : i32
    %c8_i32_29 = arith.constant 8 : i32
    %70 = arith.muli %c2_i32, %c8_i32_29 : i32
    %71 = tpu.assume_multiple %70, 8 : i32
    %72 = arith.index_cast %71 : i32 to index
    %c0_30 = arith.constant 0 : index
    %73 = vector.load %arg9[%72, %c0_30] : memref<64x128xf32, #tpu.memory_space<vmem>>, vector<8x128xf32>
    %c0_31 = arith.constant 0 : index
    %c0_32 = arith.constant 0 : index
    %74 = vector.load %arg4[%c0_31, %c0_32] : memref<32x128xf32, #tpu.memory_space<vmem>>, vector<32x128xf32>
    %cst_33 = arith.constant dense<0.000000e+00> : vector<8x128xf32>
    %75 = tpu.matmul %65, %74, %cst_33 {dimension_numbers = #tpu.dot_dimension_numbers<[1], [0], [0], [1], [0, 0, 1, 1], [], []>} : vector<8x32xf32>, vector<32x128xf32>, vector<8x128xf32> -> vector<8x128xf32>
    %76 = arith.addf %73, %75 : vector<8x128xf32>
    %77 = math.tanh %76 : vector<8x128xf32>
    %78 = arith.negf %76 : vector<8x128xf32>
    %79 = math.exp %78 : vector<8x128xf32>
    %cst_34 = arith.constant 1.000000e+00 : f32
    %80 = vector.broadcast %cst_34 : f32 to vector<8x128xf32>
    %81 = arith.addf %80, %79 : vector<8x128xf32>
    %82 = arith.divf %80, %81 : vector<8x128xf32>
    %83 = arith.select %13, %77, %82 : vector<8x128xi1>, vector<8x128xf32>
    %84 = vector.extract_strided_slice %83 {offsets = [0, 0], sizes = [8, 32], strides = [1, 1]} : vector<8x128xf32> to vector<8x32xf32>
    %85 = vector.extract_strided_slice %83 {offsets = [0, 32], sizes = [8, 32], strides = [1, 1]} : vector<8x128xf32> to vector<8x32xf32>
    %86 = vector.extract_strided_slice %83 {offsets = [0, 64], sizes = [8, 32], strides = [1, 1]} : vector<8x128xf32> to vector<8x32xf32>
    %87 = vector.extract_strided_slice %83 {offsets = [0, 96], sizes = [8, 32], strides = [1, 1]} : vector<8x128xf32> to vector<8x32xf32>
    %88 = arith.mulf %84, %63 : vector<8x32xf32>
    %89 = arith.mulf %85, %87 : vector<8x32xf32>
    %90 = arith.addf %88, %89 : vector<8x32xf32>
    %91 = math.tanh %90 : vector<8x32xf32>
    %92 = arith.mulf %86, %91 : vector<8x32xf32>
    %93 = arith.index_cast %c2_i32 : i32 to index
    %c0_35 = arith.constant 0 : index
    %c0_36 = arith.constant 0 : index
    %94 = vector.load %arg6[%93, %c0_35, %c0_36] : memref<8x8x32xf32, #tpu.memory_space<vmem>>, vector<1x8x32xf32>
    %95 = vector.shape_cast %94 : vector<1x8x32xf32> to vector<8x32xf32>
    %96 = vector.shape_cast %92 : vector<8x32xf32> to vector<1x8x32xf32>
    tpu.vector_store %arg6[%93, %c0_35, %c0_36], %96 {strides = array<i32>} : memref<8x8x32xf32, #tpu.memory_space<vmem>>, vector<1x8x32xf32>,
    %c3_i32 = arith.constant 3 : i32
    %c8_i32_37 = arith.constant 8 : i32
    %97 = arith.muli %c3_i32, %c8_i32_37 : i32
    %98 = tpu.assume_multiple %97, 8 : i32
    %99 = arith.index_cast %98 : i32 to index
    %c0_38 = arith.constant 0 : index
    %100 = vector.load %arg9[%99, %c0_38] : memref<64x128xf32, #tpu.memory_space<vmem>>, vector<8x128xf32>
    %c0_39 = arith.constant 0 : index
    %c0_40 = arith.constant 0 : index
    %101 = vector.load %arg4[%c0_39, %c0_40] : memref<32x128xf32, #tpu.memory_space<vmem>>, vector<32x128xf32>
    %cst_41 = arith.constant dense<0.000000e+00> : vector<8x128xf32>
    %102 = tpu.matmul %92, %101, %cst_41 {dimension_numbers = #tpu.dot_dimension_numbers<[1], [0], [0], [1], [0, 0, 1, 1], [], []>} : vector<8x32xf32>, vector<32x128xf32>, vector<8x128xf32> -> vector<8x128xf32>
    %103 = arith.addf %100, %102 : vector<8x128xf32>
    %104 = math.tanh %103 : vector<8x128xf32>
    %105 = arith.negf %103 : vector<8x128xf32>
    %106 = math.exp %105 : vector<8x128xf32>
    %cst_42 = arith.constant 1.000000e+00 : f32
    %107 = vector.broadcast %cst_42 : f32 to vector<8x128xf32>
    %108 = arith.addf %107, %106 : vector<8x128xf32>
    %109 = arith.divf %107, %108 : vector<8x128xf32>
    %110 = arith.select %13, %104, %109 : vector<8x128xi1>, vector<8x128xf32>
    %111 = vector.extract_strided_slice %110 {offsets = [0, 0], sizes = [8, 32], strides = [1, 1]} : vector<8x128xf32> to vector<8x32xf32>
    %112 = vector.extract_strided_slice %110 {offsets = [0, 32], sizes = [8, 32], strides = [1, 1]} : vector<8x128xf32> to vector<8x32xf32>
    %113 = vector.extract_strided_slice %110 {offsets = [0, 64], sizes = [8, 32], strides = [1, 1]} : vector<8x128xf32> to vector<8x32xf32>
    %114 = vector.extract_strided_slice %110 {offsets = [0, 96], sizes = [8, 32], strides = [1, 1]} : vector<8x128xf32> to vector<8x32xf32>
    %115 = arith.mulf %111, %90 : vector<8x32xf32>
    %116 = arith.mulf %112, %114 : vector<8x32xf32>
    %117 = arith.addf %115, %116 : vector<8x32xf32>
    %118 = math.tanh %117 : vector<8x32xf32>
    %119 = arith.mulf %113, %118 : vector<8x32xf32>
    %120 = arith.index_cast %c3_i32 : i32 to index
    %c0_43 = arith.constant 0 : index
    %c0_44 = arith.constant 0 : index
    %121 = vector.load %arg6[%120, %c0_43, %c0_44] : memref<8x8x32xf32, #tpu.memory_space<vmem>>, vector<1x8x32xf32>
    %122 = vector.shape_cast %121 : vector<1x8x32xf32> to vector<8x32xf32>
    %123 = vector.shape_cast %119 : vector<8x32xf32> to vector<1x8x32xf32>
    tpu.vector_store %arg6[%120, %c0_43, %c0_44], %123 {strides = array<i32>} : memref<8x8x32xf32, #tpu.memory_space<vmem>>, vector<1x8x32xf32>,
    %c4_i32 = arith.constant 4 : i32
    %c8_i32_45 = arith.constant 8 : i32
    %124 = arith.muli %c4_i32, %c8_i32_45 : i32
    %125 = tpu.assume_multiple %124, 8 : i32
    %126 = arith.index_cast %125 : i32 to index
    %c0_46 = arith.constant 0 : index
    %127 = vector.load %arg9[%126, %c0_46] : memref<64x128xf32, #tpu.memory_space<vmem>>, vector<8x128xf32>
    %c0_47 = arith.constant 0 : index
    %c0_48 = arith.constant 0 : index
    %128 = vector.load %arg4[%c0_47, %c0_48] : memref<32x128xf32, #tpu.memory_space<vmem>>, vector<32x128xf32>
    %cst_49 = arith.constant dense<0.000000e+00> : vector<8x128xf32>
    %129 = tpu.matmul %119, %128, %cst_49 {dimension_numbers = #tpu.dot_dimension_numbers<[1], [0], [0], [1], [0, 0, 1, 1], [], []>} : vector<8x32xf32>, vector<32x128xf32>, vector<8x128xf32> -> vector<8x128xf32>
    %130 = arith.addf %127, %129 : vector<8x128xf32>
    %131 = math.tanh %130 : vector<8x128xf32>
    %132 = arith.negf %130 : vector<8x128xf32>
    %133 = math.exp %132 : vector<8x128xf32>
    %cst_50 = arith.constant 1.000000e+00 : f32
    %134 = vector.broadcast %cst_50 : f32 to vector<8x128xf32>
    %135 = arith.addf %134, %133 : vector<8x128xf32>
    %136 = arith.divf %134, %135 : vector<8x128xf32>
    %137 = arith.select %13, %131, %136 : vector<8x128xi1>, vector<8x128xf32>
    %138 = vector.extract_strided_slice %137 {offsets = [0, 0], sizes = [8, 32], strides = [1, 1]} : vector<8x128xf32> to vector<8x32xf32>
    %139 = vector.extract_strided_slice %137 {offsets = [0, 32], sizes = [8, 32], strides = [1, 1]} : vector<8x128xf32> to vector<8x32xf32>
    %140 = vector.extract_strided_slice %137 {offsets = [0, 64], sizes = [8, 32], strides = [1, 1]} : vector<8x128xf32> to vector<8x32xf32>
    %141 = vector.extract_strided_slice %137 {offsets = [0, 96], sizes = [8, 32], strides = [1, 1]} : vector<8x128xf32> to vector<8x32xf32>
    %142 = arith.mulf %138, %117 : vector<8x32xf32>
    %143 = arith.mulf %139, %141 : vector<8x32xf32>
    %144 = arith.addf %142, %143 : vector<8x32xf32>
    %145 = math.tanh %144 : vector<8x32xf32>
    %146 = arith.mulf %140, %145 : vector<8x32xf32>
    %147 = arith.index_cast %c4_i32 : i32 to index
    %c0_51 = arith.constant 0 : index
    %c0_52 = arith.constant 0 : index
    %148 = vector.load %arg6[%147, %c0_51, %c0_52] : memref<8x8x32xf32, #tpu.memory_space<vmem>>, vector<1x8x32xf32>
    %149 = vector.shape_cast %148 : vector<1x8x32xf32> to vector<8x32xf32>
    %150 = vector.shape_cast %146 : vector<8x32xf32> to vector<1x8x32xf32>
    tpu.vector_store %arg6[%147, %c0_51, %c0_52], %150 {strides = array<i32>} : memref<8x8x32xf32, #tpu.memory_space<vmem>>, vector<1x8x32xf32>,
    %c5_i32 = arith.constant 5 : i32
    %c8_i32_53 = arith.constant 8 : i32
    %151 = arith.muli %c5_i32, %c8_i32_53 : i32
    %152 = tpu.assume_multiple %151, 8 : i32
    %153 = arith.index_cast %152 : i32 to index
    %c0_54 = arith.constant 0 : index
    %154 = vector.load %arg9[%153, %c0_54] : memref<64x128xf32, #tpu.memory_space<vmem>>, vector<8x128xf32>
    %c0_55 = arith.constant 0 : index
    %c0_56 = arith.constant 0 : index
    %155 = vector.load %arg4[%c0_55, %c0_56] : memref<32x128xf32, #tpu.memory_space<vmem>>, vector<32x128xf32>
    %cst_57 = arith.constant dense<0.000000e+00> : vector<8x128xf32>
    %156 = tpu.matmul %146, %155, %cst_57 {dimension_numbers = #tpu.dot_dimension_numbers<[1], [0], [0], [1], [0, 0, 1, 1], [], []>} : vector<8x32xf32>, vector<32x128xf32>, vector<8x128xf32> -> vector<8x128xf32>
    %157 = arith.addf %154, %156 : vector<8x128xf32>
    %158 = math.tanh %157 : vector<8x128xf32>
    %159 = arith.negf %157 : vector<8x128xf32>
    %160 = math.exp %159 : vector<8x128xf32>
    %cst_58 = arith.constant 1.000000e+00 : f32
    %161 = vector.broadcast %cst_58 : f32 to vector<8x128xf32>
    %162 = arith.addf %161, %160 : vector<8x128xf32>
    %163 = arith.divf %161, %162 : vector<8x128xf32>
    %164 = arith.select %13, %158, %163 : vector<8x128xi1>, vector<8x128xf32>
    %165 = vector.extract_strided_slice %164 {offsets = [0, 0], sizes = [8, 32], strides = [1, 1]} : vector<8x128xf32> to vector<8x32xf32>
    %166 = vector.extract_strided_slice %164 {offsets = [0, 32], sizes = [8, 32], strides = [1, 1]} : vector<8x128xf32> to vector<8x32xf32>
    %167 = vector.extract_strided_slice %164 {offsets = [0, 64], sizes = [8, 32], strides = [1, 1]} : vector<8x128xf32> to vector<8x32xf32>
    %168 = vector.extract_strided_slice %164 {offsets = [0, 96], sizes = [8, 32], strides = [1, 1]} : vector<8x128xf32> to vector<8x32xf32>
    %169 = arith.mulf %165, %144 : vector<8x32xf32>
    %170 = arith.mulf %166, %168 : vector<8x32xf32>
    %171 = arith.addf %169, %170 : vector<8x32xf32>
    %172 = math.tanh %171 : vector<8x32xf32>
    %173 = arith.mulf %167, %172 : vector<8x32xf32>
    %174 = arith.index_cast %c5_i32 : i32 to index
    %c0_59 = arith.constant 0 : index
    %c0_60 = arith.constant 0 : index
    %175 = vector.load %arg6[%174, %c0_59, %c0_60] : memref<8x8x32xf32, #tpu.memory_space<vmem>>, vector<1x8x32xf32>
    %176 = vector.shape_cast %175 : vector<1x8x32xf32> to vector<8x32xf32>
    %177 = vector.shape_cast %173 : vector<8x32xf32> to vector<1x8x32xf32>
    tpu.vector_store %arg6[%174, %c0_59, %c0_60], %177 {strides = array<i32>} : memref<8x8x32xf32, #tpu.memory_space<vmem>>, vector<1x8x32xf32>,
    %c6_i32 = arith.constant 6 : i32
    %c8_i32_61 = arith.constant 8 : i32
    %178 = arith.muli %c6_i32, %c8_i32_61 : i32
    %179 = tpu.assume_multiple %178, 8 : i32
    %180 = arith.index_cast %179 : i32 to index
    %c0_62 = arith.constant 0 : index
    %181 = vector.load %arg9[%180, %c0_62] : memref<64x128xf32, #tpu.memory_space<vmem>>, vector<8x128xf32>
    %c0_63 = arith.constant 0 : index
    %c0_64 = arith.constant 0 : index
    %182 = vector.load %arg4[%c0_63, %c0_64] : memref<32x128xf32, #tpu.memory_space<vmem>>, vector<32x128xf32>
    %cst_65 = arith.constant dense<0.000000e+00> : vector<8x128xf32>
    %183 = tpu.matmul %173, %182, %cst_65 {dimension_numbers = #tpu.dot_dimension_numbers<[1], [0], [0], [1], [0, 0, 1, 1], [], []>} : vector<8x32xf32>, vector<32x128xf32>, vector<8x128xf32> -> vector<8x128xf32>
    %184 = arith.addf %181, %183 : vector<8x128xf32>
    %185 = math.tanh %184 : vector<8x128xf32>
    %186 = arith.negf %184 : vector<8x128xf32>
    %187 = math.exp %186 : vector<8x128xf32>
    %cst_66 = arith.constant 1.000000e+00 : f32
    %188 = vector.broadcast %cst_66 : f32 to vector<8x128xf32>
    %189 = arith.addf %188, %187 : vector<8x128xf32>
    %190 = arith.divf %188, %189 : vector<8x128xf32>
    %191 = arith.select %13, %185, %190 : vector<8x128xi1>, vector<8x128xf32>
    %192 = vector.extract_strided_slice %191 {offsets = [0, 0], sizes = [8, 32], strides = [1, 1]} : vector<8x128xf32> to vector<8x32xf32>
    %193 = vector.extract_strided_slice %191 {offsets = [0, 32], sizes = [8, 32], strides = [1, 1]} : vector<8x128xf32> to vector<8x32xf32>
    %194 = vector.extract_strided_slice %191 {offsets = [0, 64], sizes = [8, 32], strides = [1, 1]} : vector<8x128xf32> to vector<8x32xf32>
    %195 = vector.extract_strided_slice %191 {offsets = [0, 96], sizes = [8, 32], strides = [1, 1]} : vector<8x128xf32> to vector<8x32xf32>
    %196 = arith.mulf %192, %171 : vector<8x32xf32>
    %197 = arith.mulf %193, %195 : vector<8x32xf32>
    %198 = arith.addf %196, %197 : vector<8x32xf32>
    %199 = math.tanh %198 : vector<8x32xf32>
    %200 = arith.mulf %194, %199 : vector<8x32xf32>
    %201 = arith.index_cast %c6_i32 : i32 to index
    %c0_67 = arith.constant 0 : index
    %c0_68 = arith.constant 0 : index
    %202 = vector.load %arg6[%201, %c0_67, %c0_68] : memref<8x8x32xf32, #tpu.memory_space<vmem>>, vector<1x8x32xf32>
    %203 = vector.shape_cast %202 : vector<1x8x32xf32> to vector<8x32xf32>
    %204 = vector.shape_cast %200 : vector<8x32xf32> to vector<1x8x32xf32>
    tpu.vector_store %arg6[%201, %c0_67, %c0_68], %204 {strides = array<i32>} : memref<8x8x32xf32, #tpu.memory_space<vmem>>, vector<1x8x32xf32>,
    %c7_i32 = arith.constant 7 : i32
    %c8_i32_69 = arith.constant 8 : i32
    %205 = arith.muli %c7_i32, %c8_i32_69 : i32
    %206 = tpu.assume_multiple %205, 8 : i32
    %207 = arith.index_cast %206 : i32 to index
    %c0_70 = arith.constant 0 : index
    %208 = vector.load %arg9[%207, %c0_70] : memref<64x128xf32, #tpu.memory_space<vmem>>, vector<8x128xf32>
    %c0_71 = arith.constant 0 : index
    %c0_72 = arith.constant 0 : index
    %209 = vector.load %arg4[%c0_71, %c0_72] : memref<32x128xf32, #tpu.memory_space<vmem>>, vector<32x128xf32>
    %cst_73 = arith.constant dense<0.000000e+00> : vector<8x128xf32>
    %210 = tpu.matmul %200, %209, %cst_73 {dimension_numbers = #tpu.dot_dimension_numbers<[1], [0], [0], [1], [0, 0, 1, 1], [], []>} : vector<8x32xf32>, vector<32x128xf32>, vector<8x128xf32> -> vector<8x128xf32>
    %211 = arith.addf %208, %210 : vector<8x128xf32>
    %212 = math.tanh %211 : vector<8x128xf32>
    %213 = arith.negf %211 : vector<8x128xf32>
    %214 = math.exp %213 : vector<8x128xf32>
    %cst_74 = arith.constant 1.000000e+00 : f32
    %215 = vector.broadcast %cst_74 : f32 to vector<8x128xf32>
    %216 = arith.addf %215, %214 : vector<8x128xf32>
    %217 = arith.divf %215, %216 : vector<8x128xf32>
    %218 = arith.select %13, %212, %217 : vector<8x128xi1>, vector<8x128xf32>
    %219 = vector.extract_strided_slice %218 {offsets = [0, 0], sizes = [8, 32], strides = [1, 1]} : vector<8x128xf32> to vector<8x32xf32>
    %220 = vector.extract_strided_slice %218 {offsets = [0, 32], sizes = [8, 32], strides = [1, 1]} : vector<8x128xf32> to vector<8x32xf32>
    %221 = vector.extract_strided_slice %218 {offsets = [0, 64], sizes = [8, 32], strides = [1, 1]} : vector<8x128xf32> to vector<8x32xf32>
    %222 = vector.extract_strided_slice %218 {offsets = [0, 96], sizes = [8, 32], strides = [1, 1]} : vector<8x128xf32> to vector<8x32xf32>
    %223 = arith.mulf %219, %198 : vector<8x32xf32>
    %224 = arith.mulf %220, %222 : vector<8x32xf32>
    %225 = arith.addf %223, %224 : vector<8x32xf32>
    %226 = math.tanh %225 : vector<8x32xf32>
    %227 = arith.mulf %221, %226 : vector<8x32xf32>
    %228 = arith.index_cast %c7_i32 : i32 to index
    %c0_75 = arith.constant 0 : index
    %c0_76 = arith.constant 0 : index
    %229 = vector.load %arg6[%228, %c0_75, %c0_76] : memref<8x8x32xf32, #tpu.memory_space<vmem>>, vector<1x8x32xf32>
    %230 = vector.shape_cast %229 : vector<1x8x32xf32> to vector<8x32xf32>
    %231 = vector.shape_cast %227 : vector<8x32xf32> to vector<1x8x32xf32>
    tpu.vector_store %arg6[%228, %c0_75, %c0_76], %231 {strides = array<i32>} : memref<8x8x32xf32, #tpu.memory_space<vmem>>, vector<1x8x32xf32>,
    %c8_i32_77 = arith.constant 8 : i32
    %c0_78 = arith.constant 0 : index
    %c0_79 = arith.constant 0 : index
    %232 = vector.load %arg7[%c0_78, %c0_79] : memref<8x32xf32, #tpu.memory_space<vmem>>, vector<8x32xf32>
    tpu.vector_store %arg7[%c0_78, %c0_79], %227 {strides = array<i32>} : memref<8x32xf32, #tpu.memory_space<vmem>>, vector<8x32xf32>,
    %c0_80 = arith.constant 0 : index
    %c0_81 = arith.constant 0 : index
    %233 = vector.load %arg8[%c0_80, %c0_81] : memref<8x32xf32, #tpu.memory_space<vmem>>, vector<8x32xf32>
    tpu.vector_store %arg8[%c0_80, %c0_81], %225 {strides = array<i32>} : memref<8x32xf32, #tpu.memory_space<vmem>>, vector<8x32xf32>,
    return
  }
  func.func @transform_0(%arg0: i32, %arg1: i32) -> (i32, i32, i32) {
    %c0_i32 = arith.constant 0 : i32
    %c0_i32_0 = arith.constant 0 : i32
    return %arg1, %arg0, %c0_i32 : i32, i32, i32
  }
  func.func @transform_1(%arg0: i32, %arg1: i32) -> (i32, i32) {
    %c0_i32 = arith.constant 0 : i32
    %c0_i32_0 = arith.constant 0 : i32
    %c0_i32_1 = arith.constant 0 : i32
    return %c0_i32, %c0_i32_0 : i32, i32
  }
  func.func @transform_2(%arg0: i32, %arg1: i32) -> (i32, i32) {
    %c0_i32 = arith.constant 0 : i32
    %c0_i32_0 = arith.constant 0 : i32
    %c0_i32_1 = arith.constant 0 : i32
    return %c0_i32, %c0_i32_0 : i32, i32
  }
  func.func @transform_3(%arg0: i32, %arg1: i32) -> (i32, i32) {
    %c0_i32 = arith.constant 0 : i32
    %c0_i32_0 = arith.constant 0 : i32
    %c0_i32_1 = arith.constant 0 : i32
    return %c0_i32, %c0_i32_0 : i32, i32
  }
  func.func @transform_4(%arg0: i32, %arg1: i32) -> (i32, i32, i32) {
    %c0_i32 = arith.constant 0 : i32
    %c0_i32_0 = arith.constant 0 : i32
    return %arg1, %arg0, %c0_i32 : i32, i32, i32
  }
}

</mosaic_0001>

<bundles_post_ra>
// kernel: tpu_custom_call.1
= control target key start
LH: loop header
LB: loop body
LE: loop exit
PB: predicated region body
PF: predicated region fallthrough
CT: control target
= control target key end

     0   :  { %9 = vsyncpa [#allocation6], 0  ;;  %s1787_s0 = inlined_call_operand.hbm [shape: f32[8,8,16], index: 0, kind: input, shape index: {}]   ;;  %s1788_s1 = inlined_call_operand.hbm [shape: f32[16,128], index: 1, kind: input, shape index: {}]   ;;  %s1789_s2 = inlined_call_operand.hbm [shape: f32[32,128], index: 2, kind: input, shape index: {}]   ;;  %s1790_s3 = inlined_call_operand.vmem [shape: f32[1,128], index: 3, kind: input, shape index: {}]   ;;  %s1791_s4 = inlined_call_operand.hbm [shape: f32[8,8,32], index: 4, kind: output, shape index: {}]  }
   0x1   :  { %10 = vsyncpa [#allocation9], 0 }
   0x2   :  { %11 = vsyncpa [#allocation7], 0  ;;  %s1526_s15 = smov [#allocation8]   ;;  %s1527_s17 = smov [#allocation5]  }
   0x3   :  { %s29_s16 = sshll.u32 %s1526_s15, 4  ;;  %s17_s18 = sshll.u32 %s1527_s17, 4  ;;  %s30_s16 = int_to_ptr.vmem [resolvable:$true] %s29_s16  ;;  %s1562_s18 = int_to_ptr.vmem [resolvable:$true] %s17_s18 }
   0x4   :  { %s1432_s21 = scalar_lea.hbm %s1788_s1, 256 }
   0x5   :  { %p1433_p0 = scmp.ne.s32.totalorder %s1788_s1, %s1432_s21  ;;  %p1436_p1 = scmp.lt.u32.totalorder %s1432_s21, %s1788_s1 }
   0x7   :  { %p1438_p2 = pnand %p1436_p1, %p1433_p0 }
   0x9   :  { %1441 = shalt.err (!%p1438_p2)
}
   0xa   :  { %s1442_s26 = scalar_lea.vmem %s30_s16, 256  ;;  %p1447_p4 = scmp.lt.s32.totalorder %s30_s16, %s30_s16 }
   0xb   :  { %p1443_p3 = scmp.ne.s32.totalorder %s30_s16, %s1442_s26  ;;  %p1448_p5 = scmp.lt.s32.totalorder %s1442_s26, %s1442_s26 }
   0xd   :  { %p1449_p6 = por %p1448_p5, %p1447_p4 }
   0xf   :  { %p1450_p7 = pnand %p1449_p6, %p1443_p3 }
  0x11   :  { %1453 = shalt.err (!%p1450_p7)
}
  0x12   :  { %s1528_s27 = smov 128   ;;  %s1529_s28 = smov 8  }
  0x13   :  { %35 = dma.hbm_to_vmem [thread:$0]  %s1788_s1, 256, %s30_s16, [#allocation9], %s1528_s27, %s1528_s27, %s1529_s28  }
  0x14   :  { %s1454_s7 = scalar_lea.hbm %s1787_s0, 1024 }
  0x15   :  { %p1455_p8 = scmp.ne.s32.totalorder %s1787_s0, %s1454_s7  ;;  %p1458_p9 = scmp.lt.u32.totalorder %s1454_s7, %s1787_s0 }
  0x17   :  { %p1460_p10 = pnand %p1458_p9, %p1455_p8 }
  0x19   :  { %1463 = shalt.err (!%p1460_p10)
}
  0x1a   :  { %s1464_s12 = scalar_lea.vmem %s1562_s18, 1024  ;;  %p1469_p12 = scmp.lt.s32.totalorder %s1562_s18, %s1562_s18 }
  0x1b   :  { %p1465_p11 = scmp.ne.s32.totalorder %s1562_s18, %s1464_s12  ;;  %p1470_p13 = scmp.lt.s32.totalorder %s1464_s12, %s1464_s12 }
  0x1d   :  { %p1471_p0 = por %p1470_p13, %p1469_p12 }
  0x1f   :  { %p1472_p1 = pnand %p1471_p0, %p1465_p11 }
  0x21   :  { %1475 = shalt.err (!%p1472_p1)
}
  0x22   :  { %23 = dma.hbm_to_vmem [thread:$0]  %s1787_s0, 1024, %s1562_s18, [#allocation6], %s1528_s27, %s1528_s27, %s1529_s28  }
  0x23   :  { %s1530_s14 = smov [#allocation10]   ;;  %s1476_s19 = scalar_lea.hbm %s1789_s2, 512 }
  0x24   :  { %s41_s15 = sshll.u32 %s1530_s14, 4  ;;  %p1477_p2 = scmp.ne.s32.totalorder %s1789_s2, %s1476_s19  ;;  %s42_s15 = int_to_ptr.vmem [resolvable:$true] %s41_s15 }
  0x25   :  { %p1480_p3 = scmp.lt.u32.totalorder %s1476_s19, %s1789_s2 }
  0x27   :  { %p1482_p4 = pnand %p1480_p3, %p1477_p2 }
  0x29   :  { %1485 = shalt.err (!%p1482_p4)
}
  0x2a   :  { %s1486_s24 = scalar_lea.vmem %s42_s15, 512  ;;  %p1491_p6 = scmp.lt.s32.totalorder %s42_s15, %s42_s15 }
  0x2b   :  { %p1487_p5 = scmp.ne.s32.totalorder %s42_s15, %s1486_s24  ;;  %p1492_p7 = scmp.lt.s32.totalorder %s1486_s24, %s1486_s24 }
  0x2d   :  { %p1493_p8 = por %p1492_p7, %p1491_p6 }
  0x2f   :  { %p1494_p9 = pnand %p1493_p8, %p1487_p5 }
  0x31   :  { %1497 = shalt.err (!%p1494_p9)
}
  0x32   :  { %47 = dma.hbm_to_vmem [thread:$0]  %s1789_s2, 512, %s42_s15, [#allocation9], %s1528_s27, %s1528_s27, %s1529_s28  }
  0x33   :  { %1520 = dma.done.wait [#allocation6], 1024  }
  0x34   :  { %1521 = vsyncadd [#allocation6], 4294966272 }
  0x35   :  { %1522 = dma.done.wait [#allocation9], 768  }
  0x36   :  { %1523 = vsyncadd [#allocation9], 4294966528  ;;  %v1531_v0 = vmov 0.0|0.0   ;;  %vm1532_vm0 = vmmov 0   ;;  %v1533_v1 = vmov 0.0   ;;  %vm63_vm1 = vcmask 261120  }
  0x37   :  { %1309 = vmatprep.subr.bf16.mxu1 %v1531_v0  ;;  %1225 = vmatprep.mubr.msk.f32.mxu1 %vm1532_vm0, %v1533_v1  ;;  %64 = vst.msk [vmem:[#allocation2] sm:$0xff] %vm63_vm1, %v1533_v1  ;;  %65 = vst.msk [vmem:[#allocation3] sm:$0xff] %vm63_vm1, %v1533_v1  ;;  %vm83_vm2 = vcmask 130048   ;;  %v74_v2 = vld [vmem:[#allocation8] sm:$0xff]  ;;  %v75_v3 = vld [vmem:[#allocation8 + $0x8] sm:$0xff]  ;;  %v221_v24 = vlaneseq  ;;  %s1535_s26 = smov 96  }
  0x38   :  { %v227_v4 = vld [vmem:[#allocation10] sm:$0xff]  ;;  %v1305_v5 = vpack.c.bf16 %v75_v3, %v74_v2  ;;  %v228_v6 = vld [vmem:[#allocation10 + $0x8] sm:$0xff]  ;;  %v66_v7 = vld [vmem:[#allocation5] sm:$0xff]  ;;  %s1536_s29 = smov [#allocation11]  }
  0x39   :  { %v1621_v8 = vpack.c.bf16 %v228_v6, %v227_v4  ;;  %1205 = vmatprep.mubr.msk.f32.mxu0 %vm83_vm2, %v66_v7  ;;  %v229_v9 = vld [vmem:[#allocation10 + $0x10] sm:$0xff]  ;;  %v230_v10 = vld [vmem:[#allocation10 + $0x18] sm:$0xff]  ;;  %v1646_v14 = vld [vmem:[%s1790_s3] ss:$0 sm:$0xff]  ;;  %v1649_v25 = vand.u32 127, %v221_v24  ;;  %s1534_s3 = smov 64  }
  0x3a   :  { %1306 = vmatprep.subr.bf16.mxu0 %v1305_v5  ;;  %v67_v11 = vld [vmem:[#allocation5 + $0x8] sm:$0xff]  ;;  %v1625_v12 = vpack.c.bf16 %v230_v10, %v229_v9  ;;  %v68_v54 = vld [vmem:[#allocation5 + $0x10] sm:$0xff]  ;;  %v69_v55 = vld [vmem:[#allocation5 + $0x18] sm:$0xff]  ;;  %s1113_s30 = sshll.u32 %s1536_s29, 4  ;;  %s1114_s30 = int_to_ptr.vmem [resolvable:$true] %s1113_s30 }
  0x3b   :  { %1311 = vmatpush3.bf16.msra.mxu1 %v1621_v8  ;;  %1308 = vmatpush3.bf16.msra.mxu0 %v1305_v5  ;;  %vm223_vm3 = vcmp.ge.s32.totalorder %v1649_v25, 96  ;;  %v70_v56 = vld [vmem:[#allocation5 + $0x20] sm:$0xff]  ;;  %v71_v57 = vld [vmem:[#allocation5 + $0x28] sm:$0xff]  ;;  %v72_v58 = vld [vmem:[#allocation5 + $0x30] sm:$0xff]  ;;  %s1498_s5 = scalar_lea.vmem %s1114_s30, 1024  ;;  %p1503_p11 = scmp.lt.s32.totalorder %s1114_s30, %s1114_s30 }
  0x3c   :  { %1312 = vmatprep.subr.bf16.mxu1 %v1531_v0  ;;  %1321 = vmatprep.subr.bf16.mxu0 %v1531_v0  ;;  %v73_v59 = vld [vmem:[#allocation5 + $0x38] sm:$0xff]  ;;  %p1499_p10 = scmp.ne.s32.totalorder %s1114_s30, %s1498_s5  ;;  %p1504_p12 = scmp.lt.s32.totalorder %s1498_s5, %s1498_s5 }
  0x3e   :  { %1206 = vmatmul.mubr.msk.f32.vlgmr.msra.gmra.mrb[0].mxu0 %vm83_vm2, %v67_v11  ;;  %v224_v13 = vld [vmem:[#allocation2] sm:$0xff]  ;;  %v225_v31 = vld [vmem:[#allocation3] sm:$0xff]  ;;  %p1505_p13 = por %p1504_p12, %p1503_p11 }
  0x3f   :  { %1314 = vmatpush3.bf16.msra.mxu1 %v1625_v12  ;;  %1323 = vmatpush3.bf16.msra.mxu0 %v1621_v8 }
  0x40   :  { %1315 = vmatprep.subr.bf16.mxu1 %v1531_v0  ;;  %1324 = vmatprep.subr.bf16.mxu0 %v1531_v0  ;;  %p1506_p0 = pnand %p1505_p13, %p1499_p10 }
  0x41   :  { %1208 = vmatprep.mubr.msk.f32.mxu0 %vm83_vm2, %v68_v54 }
  0x42   :  { %1226 = vmatmul.mubr.msk.f32.vlgmr.msra.gmra.mrb[0].mxu1 %vm63_vm1, %v224_v13  ;;  %1209 = vmatmul.mubr.msk.f32.gmra.mrb[2].mxu0 %vm83_vm2, %v69_v55 }
  0x43   :  { %1317 = vmatpush3.bf16.msra.mxu1 %v1621_v8  ;;  %1236 = vmatprep.mubr.msk.f32.mxu1 %vm1532_vm0, %v1533_v1 }
  0x44   :  { %1318 = vmatprep.subr.bf16.mxu1 %v1531_v0  ;;  %1326 = vmatpush3.bf16.msra.mxu0 %v1625_v12 }
  0x45   :  { %1333 = vmatprep.subr.bf16.mxu0 %v1531_v0  ;;  %1211 = vmatprep.mubr.msk.f32.mxu0 %vm83_vm2, %v70_v56 }
  0x46   :  { %1212 = vmatmul.mubr.msk.f32.gmra.mrb[4].mxu0 %vm83_vm2, %v71_v57 }
  0x47   :  { %1320 = vmatpush3.bf16.msra.mxu1 %v1625_v12  ;;  %1214 = vmatprep.mubr.msk.f32.mxu0 %vm83_vm2, %v72_v58 }
  0x48   :  { %1327 = vmatprep.subr.bf16.mxu1 %v1531_v0 }
  0x4a   :  { %1215 = vmatmul.mubr.msk.f32.gmra.mrb[6].mxu0 %vm83_vm2, %v73_v59 }
  0x4b   :  { %1247 = vmatprep.mubr.msk.f32.mxu0 %vm1532_vm0, %v1533_v1 }
 0x111   :  { %v1207_v15 = vpop.f32.mrb[0].mxu0 }
 0x112   :  { %v174_v16 = vpop.f32.mrb[1].mxu0  ;;  %v180_v39 = vadd.f32 %v1207_v15, %v1646_v14 }
 0x113   :  { %v175_v17 = vadd.f32 %v1646_v14, %v174_v16 }
 0x115   :  { %v301_v18 = vpop.f32.mrb[0].mxu1  ;;  %v1210_v63 = vpop.f32.mrb[2].mxu0 }
 0x116   :  { %v305_v19 = vadd.f32 %v301_v18, %v175_v17  ;;  %v1227_v20 = vpop.f32.mrb[1].mxu1  ;;  %v184_v2 = vpop.f32.mrb[3].mxu0 }
 0x117   :  { %v185_v9 = vadd.f32 %v1646_v14, %v184_v2 }
 0x118   :  { %v1136_v21 = vmul.f32 -1.442695, %v305_v19 }
 0x119   :  { %v1681_v3 = vpop.f32.mrb[4].mxu0 }
 0x11a   :  { %1368 = vpow2.f32 %v1136_v21  ;;  %v1683_v4 = vpop.f32.mrb[5].mxu0 }
 0x11b   :  { %1370 = vtanh.f32 %v305_v19 }
 0x11d   :  { %v1685_v5 = vpop.f32.mrb[6].mxu0 }
 0x11e   :  { %v1687_v6 = vpop.f32.mrb[7].mxu0 }
 0x124   :  { %v1369_v22 = vpop.eup %1368 }
 0x125   :  { %v310_v23 = vadd.f32 1.0, %v1369_v22  ;;  %v1371_v26 = vpop.eup %1370 }
 0x127   :  { %1372 = vrcp.f32 %v310_v23 }
 0x131   :  { %v1373_v27 = vpop.eup %1372 }
 0x132   :  { %v313_v28 = vsel %vm223_vm3, %v1371_v26, %v1373_v27 }
 0x133   :  { %316 = vrot.lane.b32.xlu0 %v313_v28, %s1534_s3  ;;  %v314_v32 = vmul.f32 %v313_v28, %v225_v31  ;;  %v190_v31 = vadd.f32 %v1210_v63, %v1646_v14 }
 0x1a5   :  { %v317_v29 = vpop.permute.xlu0 %316 }
 0x1a6   :  { %v319_v30 = vmul.f32 %v317_v29, %v313_v28 }
 0x1a8   :  { %321 = vrot.lane.b32.xlu0 %v319_v30, %s1535_s26 }
 0x21a   :  { %v322_v33 = vpop.permute.xlu0 %321 }
 0x21b   :  { %v324_v34 = vadd.f32 %v322_v33, %v314_v32 }
 0x21d   :  { %1374 = vtanh.f32 %v324_v34 }
 0x227   :  { %v1375_v35 = vpop.eup %1374 }
 0x228   :  { %327 = vrot.lane.b32.xlu1 %v1375_v35, %s1534_s3 }
 0x29a   :  { %v328_v36 = vpop.permute.xlu1 %327 }
 0x29b   :  { %v330_v37 = vmul.f32 %v328_v36, %v313_v28 }
 0x29d   :  { %332 = vrot.lane.b32.xlu1 %v330_v37, %s1534_s3 }
 0x30f   :  { %v333_v38 = vpop.permute.xlu1 %332 }
 0x310   :  { %335 = vst.msk [vmem:[#allocation11] sm:$0xff] %vm63_vm1, %v333_v38  ;;  %1237 = vmatmul.mubr.msk.f32.vlgmr.msra.gmra.mrb[2].mxu1 %vm63_vm1, %v333_v38 }
 0x311   :  { %1329 = vmatpush3.bf16.msra.mxu1 %v1621_v8  ;;  %1258 = vmatprep.mubr.msk.f32.mxu1 %vm1532_vm0, %v1533_v1 }
 0x312   :  { %1330 = vmatprep.subr.bf16.mxu1 %v1531_v0 }
 0x315   :  { %1332 = vmatpush3.bf16.msra.mxu1 %v1625_v12 }
 0x316   :  { %1339 = vmatprep.subr.bf16.mxu1 %v1531_v0 }
 0x3e3   :  { %v410_v40 = vpop.f32.mrb[2].mxu1 }
 0x3e4   :  { %v414_v41 = vadd.f32 %v410_v40, %v180_v39  ;;  %v1238_v42 = vpop.f32.mrb[3].mxu1 }
 0x3e6   :  { %v1138_v43 = vmul.f32 -1.442695, %v414_v41 }
 0x3e8   :  { %1376 = vpow2.f32 %v1138_v43 }
 0x3e9   :  { %1378 = vtanh.f32 %v414_v41 }
 0x3f2   :  { %v1377_v44 = vpop.eup %1376 }
 0x3f3   :  { %v419_v45 = vadd.f32 1.0, %v1377_v44  ;;  %v1379_v46 = vpop.eup %1378 }
 0x3f5   :  { %1380 = vrcp.f32 %v419_v45 }
 0x3ff   :  { %v1381_v47 = vpop.eup %1380 }
 0x400   :  { %v422_v48 = vsel %vm223_vm3, %v1379_v46, %v1381_v47 }
 0x401   :  { %425 = vrot.lane.b32.xlu0 %v422_v48, %s1534_s3  ;;  %v423_v51 = vmul.f32 %v422_v48, %v324_v34 }
 0x473   :  { %v426_v49 = vpop.permute.xlu0 %425 }
 0x474   :  { %v428_v50 = vmul.f32 %v426_v49, %v422_v48 }
 0x476   :  { %430 = vrot.lane.b32.xlu1 %v428_v50, %s1535_s26  ;;  %v195_v50 = vadd.f32 %v1646_v14, %v1683_v4 }
 0x4e8   :  { %v431_v52 = vpop.permute.xlu1 %430 }
 0x4e9   :  { %v433_v53 = vadd.f32 %v431_v52, %v423_v51 }
 0x4eb   :  { %1382 = vtanh.f32 %v433_v53 }
 0x4f5   :  { %v1383_v60 = vpop.eup %1382 }
 0x4f6   :  { %436 = vrot.lane.b32.xlu0 %v1383_v60, %s1534_s3 }
 0x568   :  { %v437_v61 = vpop.permute.xlu0 %436 }
 0x569   :  { %v439_v62 = vmul.f32 %v437_v61, %v422_v48 }
 0x56b   :  { %441 = vrot.lane.b32.xlu1 %v439_v62, %s1534_s3 }
 0x5dd   :  { %v442_v7 = vpop.permute.xlu1 %441 }
 0x5de   :  { %445 = vst.msk [vmem:[#allocation11 + $0x8] sm:$0xff] %vm63_vm1, %v442_v7  ;;  %1248 = vmatmul.mubr.msk.f32.vlgmr.msra.gmra.mrb[8].mxu0 %vm63_vm1, %v442_v7 }
 0x5df   :  { %1335 = vmatpush3.bf16.msra.mxu0 %v1621_v8  ;;  %1269 = vmatprep.mubr.msk.f32.mxu0 %vm1532_vm0, %v1533_v1 }
 0x5e0   :  { %1336 = vmatprep.subr.bf16.mxu0 %v1531_v0 }
 0x5e3   :  { %1338 = vmatpush3.bf16.msra.mxu0 %v1625_v12 }
 0x5e4   :  { %1345 = vmatprep.subr.bf16.mxu0 %v1531_v0 }
 0x6b1   :  { %v520_v10 = vpop.f32.mrb[8].mxu0 }
 0x6b2   :  { %v524_v11 = vadd.f32 %v520_v10, %v185_v9  ;;  %v1249_v13 = vpop.f32.mrb[9].mxu0 }
 0x6b4   :  { %v1140_v15 = vmul.f32 -1.442695, %v524_v11 }
 0x6b6   :  { %1384 = vpow2.f32 %v1140_v15 }
 0x6b7   :  { %1386 = vtanh.f32 %v524_v11  ;;  %v200_v11 = vadd.f32 %v1681_v3, %v1646_v14 }
 0x6c0   :  { %v1385_v16 = vpop.eup %1384 }
 0x6c1   :  { %v529_v17 = vadd.f32 1.0, %v1385_v16  ;;  %v1387_v18 = vpop.eup %1386 }
 0x6c3   :  { %1388 = vrcp.f32 %v529_v17 }
 0x6cd   :  { %v1389_v19 = vpop.eup %1388 }
 0x6ce   :  { %v532_v20 = vsel %vm223_vm3, %v1387_v18, %v1389_v19 }
 0x6cf   :  { %535 = vrot.lane.b32.xlu0 %v532_v20, %s1534_s3  ;;  %v533_v23 = vmul.f32 %v532_v20, %v433_v53 }
 0x741   :  { %v536_v21 = vpop.permute.xlu0 %535 }
 0x742   :  { %v538_v22 = vmul.f32 %v536_v21, %v532_v20 }
 0x744   :  { %540 = vrot.lane.b32.xlu1 %v538_v22, %s1535_s26 }
 0x7b6   :  { %v541_v24 = vpop.permute.xlu1 %540 }
 0x7b7   :  { %v543_v26 = vadd.f32 %v541_v24, %v533_v23 }
 0x7b9   :  { %1390 = vtanh.f32 %v543_v26 }
 0x7c3   :  { %v1391_v27 = vpop.eup %1390 }
 0x7c4   :  { %546 = vrot.lane.b32.xlu0 %v1391_v27, %s1534_s3 }
 0x836   :  { %v547_v28 = vpop.permute.xlu0 %546 }
 0x837   :  { %v549_v29 = vmul.f32 %v547_v28, %v532_v20  ;;  %v205_v28 = vadd.f32 %v1646_v14, %v1687_v6 }
 0x839   :  { %551 = vrot.lane.b32.xlu1 %v549_v29, %s1534_s3 }
 0x8ab   :  { %v552_v30 = vpop.permute.xlu1 %551 }
 0x8ac   :  { %555 = vst.msk [vmem:[#allocation11 + $0x10] sm:$0xff] %vm63_vm1, %v552_v30  ;;  %1259 = vmatmul.mubr.msk.f32.vlgmr.msra.gmra.mrb[4].mxu1 %vm63_vm1, %v552_v30 }
 0x8ad   :  { %1341 = vmatpush3.bf16.msra.mxu1 %v1621_v8  ;;  %1280 = vmatprep.mubr.msk.f32.mxu1 %vm1532_vm0, %v1533_v1 }
 0x8ae   :  { %1342 = vmatprep.subr.bf16.mxu1 %v1531_v0 }
 0x8b1   :  { %1344 = vmatpush3.bf16.msra.mxu1 %v1625_v12 }
 0x8b2   :  { %1351 = vmatprep.subr.bf16.mxu1 %v1531_v0 }
 0x97f   :  { %v630_v32 = vpop.f32.mrb[4].mxu1 }
 0x980   :  { %v634_v33 = vadd.f32 %v630_v32, %v190_v31  ;;  %v1260_v34 = vpop.f32.mrb[5].mxu1 }
 0x982   :  { %v1142_v35 = vmul.f32 -1.442695, %v634_v33 }
 0x984   :  { %1392 = vpow2.f32 %v1142_v35 }
 0x985   :  { %1394 = vtanh.f32 %v634_v33 }
 0x98e   :  { %v1393_v36 = vpop.eup %1392 }
 0x98f   :  { %v639_v37 = vadd.f32 1.0, %v1393_v36  ;;  %v1395_v38 = vpop.eup %1394 }
 0x991   :  { %1396 = vrcp.f32 %v639_v37 }
 0x99b   :  { %v1397_v39 = vpop.eup %1396 }
 0x99c   :  { %v642_v40 = vsel %vm223_vm3, %v1395_v38, %v1397_v39 }
 0x99d   :  { %645 = vrot.lane.b32.xlu0 %v642_v40, %s1534_s3  ;;  %v643_v43 = vmul.f32 %v642_v40, %v543_v26 }
 0xa0f   :  { %v646_v41 = vpop.permute.xlu0 %645 }
 0xa10   :  { %v648_v42 = vmul.f32 %v646_v41, %v642_v40 }
 0xa12   :  { %650 = vrot.lane.b32.xlu1 %v648_v42, %s1535_s26 }
 0xa84   :  { %v651_v44 = vpop.permute.xlu1 %650 }
 0xa85   :  { %v653_v45 = vadd.f32 %v651_v44, %v643_v43 }
 0xa87   :  { %1398 = vtanh.f32 %v653_v45 }
 0xa91   :  { %v1399_v46 = vpop.eup %1398 }
 0xa92   :  { %656 = vrot.lane.b32.xlu0 %v1399_v46, %s1534_s3  ;;  %v210_v46 = vadd.f32 %v1685_v5, %v1646_v14 }
 0xb04   :  { %v657_v47 = vpop.permute.xlu0 %656 }
 0xb05   :  { %v659_v48 = vmul.f32 %v657_v47, %v642_v40 }
 0xb07   :  { %661 = vrot.lane.b32.xlu1 %v659_v48, %s1534_s3 }
 0xb79   :  { %v662_v49 = vpop.permute.xlu1 %661 }
 0xb7a   :  { %665 = vst.msk [vmem:[#allocation11 + $0x18] sm:$0xff] %vm63_vm1, %v662_v49  ;;  %1270 = vmatmul.mubr.msk.f32.vlgmr.msra.gmra.mrb[10].mxu0 %vm63_vm1, %v662_v49 }
 0xb7b   :  { %1347 = vmatpush3.bf16.msra.mxu0 %v1621_v8  ;;  %1291 = vmatprep.mubr.msk.f32.mxu0 %vm1532_vm0, %v1533_v1 }
 0xb7c   :  { %1348 = vmatprep.subr.bf16.mxu0 %v1531_v0 }
 0xb7f   :  { %1350 = vmatpush3.bf16.msra.mxu0 %v1625_v12 }
 0xc4d   :  { %v740_v51 = vpop.f32.mrb[10].mxu0 }
 0xc4e   :  { %v744_v52 = vadd.f32 %v740_v51, %v195_v50  ;;  %v1271_v53 = vpop.f32.mrb[11].mxu0 }
 0xc50   :  { %v1144_v54 = vmul.f32 -1.442695, %v744_v52 }
 0xc52   :  { %1400 = vpow2.f32 %v1144_v54 }
 0xc53   :  { %1402 = vtanh.f32 %v744_v52 }
 0xc5c   :  { %v1401_v55 = vpop.eup %1400 }
 0xc5d   :  { %v749_v56 = vadd.f32 1.0, %v1401_v55  ;;  %v1403_v57 = vpop.eup %1402 }
 0xc5f   :  { %1404 = vrcp.f32 %v749_v56 }
 0xc69   :  { %v1405_v58 = vpop.eup %1404 }
 0xc6a   :  { %v752_v59 = vsel %vm223_vm3, %v1403_v57, %v1405_v58 }
 0xc6b   :  { %755 = vrot.lane.b32.xlu0 %v752_v59, %s1534_s3  ;;  %v753_v62 = vmul.f32 %v752_v59, %v653_v45 }
 0xcdd   :  { %v756_v60 = vpop.permute.xlu0 %755 }
 0xcde   :  { %v758_v61 = vmul.f32 %v756_v60, %v752_v59 }
 0xce0   :  { %760 = vrot.lane.b32.xlu1 %v758_v61, %s1535_s26 }
 0xd52   :  { %v761_v63 = vpop.permute.xlu1 %760 }
 0xd53   :  { %v763_v2 = vadd.f32 %v761_v63, %v753_v62 }
 0xd55   :  { %1406 = vtanh.f32 %v763_v2 }
 0xd5f   :  { %v1407_v4 = vpop.eup %1406 }
 0xd60   :  { %766 = vrot.lane.b32.xlu0 %v1407_v4, %s1534_s3 }
 0xdd2   :  { %v767_v7 = vpop.permute.xlu0 %766 }
 0xdd3   :  { %v769_v9 = vmul.f32 %v767_v7, %v752_v59 }
 0xdd5   :  { %771 = vrot.lane.b32.xlu1 %v769_v9, %s1534_s3 }
 0xe47   :  { %v772_v10 = vpop.permute.xlu1 %771 }
 0xe48   :  { %775 = vst.msk [vmem:[#allocation11 + $0x20] sm:$0xff] %vm63_vm1, %v772_v10  ;;  %1281 = vmatmul.mubr.msk.f32.vlgmr.msra.gmra.mrb[6].mxu1 %vm63_vm1, %v772_v10 }
 0xe49   :  { %1353 = vmatpush3.bf16.msra.mxu1 %v1621_v8  ;;  %1302 = vmatprep.mubr.msk.f32.mxu1 %vm1532_vm0, %v1533_v1 }
 0xe4a   :  { %1354 = vmatprep.subr.bf16.mxu1 %v1531_v0 }
 0xe4d   :  { %1356 = vmatpush3.bf16.msra.mxu1 %v1625_v12 }
 0xf1b   :  { %v850_v13 = vpop.f32.mrb[6].mxu1 }
 0xf1c   :  { %v854_v15 = vadd.f32 %v850_v13, %v200_v11  ;;  %v1282_v16 = vpop.f32.mrb[7].mxu1 }
 0xf1e   :  { %v1146_v17 = vmul.f32 -1.442695, %v854_v15 }
 0xf20   :  { %1408 = vpow2.f32 %v1146_v17 }
 0xf21   :  { %1410 = vtanh.f32 %v854_v15 }
 0xf2a   :  { %v1409_v18 = vpop.eup %1408 }
 0xf2b   :  { %v859_v19 = vadd.f32 1.0, %v1409_v18  ;;  %v1411_v8 = vpop.eup %1410 }
 0xf2d   :  { %1412 = vrcp.f32 %v859_v19 }
 0xf37   :  { %v1413_v20 = vpop.eup %1412 }
 0xf38   :  { %v862_v1 = vsel %vm223_vm3, %v1411_v8, %v1413_v20 }
 0xf39   :  { %865 = vrot.lane.b32.xlu0 %v862_v1, %s1534_s3  ;;  %v863_v3 = vmul.f32 %v862_v1, %v763_v2 }
 0xfab   :  { %v866_v0 = vpop.permute.xlu0 %865 }
 0xfac   :  { %v868_v12 = vmul.f32 %v866_v0, %v862_v1 }
 0xfae   :  { %870 = vrot.lane.b32.xlu1 %v868_v12, %s1535_s26 }
0x1020   :  { %v871_v21 = vpop.permute.xlu1 %870 }
0x1021   :  { %v873_v22 = vadd.f32 %v871_v21, %v863_v3 }
0x1023   :  { %1414 = vtanh.f32 %v873_v22 }
0x102d   :  { %v1415_v23 = vpop.eup %1414 }
0x102e   :  { %876 = vrot.lane.b32.xlu0 %v1415_v23, %s1534_s3 }
0x10a0   :  { %v877_v24 = vpop.permute.xlu0 %876 }
0x10a1   :  { %v879_v26 = vmul.f32 %v877_v24, %v862_v1 }
0x10a3   :  { %881 = vrot.lane.b32.xlu1 %v879_v26, %s1534_s3 }
0x1115   :  { %v882_v27 = vpop.permute.xlu1 %881 }
0x1116   :  { %885 = vst.msk [vmem:[#allocation11 + $0x28] sm:$0xff] %vm63_vm1, %v882_v27  ;;  %1292 = vmatmul.mubr.msk.f32.vlgmr.msra.gmra.mrb[12].mxu0 %vm63_vm1, %v882_v27 }
0x11e9   :  { %v960_v29 = vpop.f32.mrb[12].mxu0 }
0x11ea   :  { %v964_v30 = vadd.f32 %v960_v29, %v205_v28  ;;  %v1293_v31 = vpop.f32.mrb[13].mxu0 }
0x11ec   :  { %v1148_v32 = vmul.f32 -1.442695, %v964_v30 }
0x11ee   :  { %1416 = vpow2.f32 %v1148_v32 }
0x11ef   :  { %1418 = vtanh.f32 %v964_v30 }
0x11f8   :  { %v1417_v33 = vpop.eup %1416 }
0x11f9   :  { %v969_v34 = vadd.f32 1.0, %v1417_v33  ;;  %v1419_v35 = vpop.eup %1418 }
0x11fb   :  { %1420 = vrcp.f32 %v969_v34 }
0x1205   :  { %v1421_v36 = vpop.eup %1420 }
0x1206   :  { %v972_v37 = vsel %vm223_vm3, %v1419_v35, %v1421_v36 }
0x1207   :  { %975 = vrot.lane.b32.xlu0 %v972_v37, %s1534_s3  ;;  %v973_v6 = vmul.f32 %v972_v37, %v873_v22 }
0x1279   :  { %v976_v38 = vpop.permute.xlu0 %975 }
0x127a   :  { %v978_v39 = vmul.f32 %v976_v38, %v972_v37 }
0x127c   :  { %980 = vrot.lane.b32.xlu1 %v978_v39, %s1535_s26 }
0x12ee   :  { %v981_v40 = vpop.permute.xlu1 %980 }
0x12ef   :  { %v983_v41 = vadd.f32 %v981_v40, %v973_v6 }
0x12f1   :  { %1422 = vtanh.f32 %v983_v41 }
0x12fb   :  { %v1423_v42 = vpop.eup %1422 }
0x12fc   :  { %986 = vrot.lane.b32.xlu0 %v1423_v42, %s1534_s3 }
0x136e   :  { %v987_v43 = vpop.permute.xlu0 %986 }
0x136f   :  { %v989_v44 = vmul.f32 %v987_v43, %v972_v37 }
0x1371   :  { %991 = vrot.lane.b32.xlu1 %v989_v44, %s1534_s3 }
0x13e3   :  { %v992_v45 = vpop.permute.xlu1 %991 }
0x13e4   :  { %995 = vst.msk [vmem:[#allocation11 + $0x30] sm:$0xff] %vm63_vm1, %v992_v45  ;;  %1303 = vmatmul.mubr.msk.f32.vlgmr.msra.gmra.mrb[8].mxu1 %vm63_vm1, %v992_v45 }
0x14b7   :  { %v1070_v47 = vpop.f32.mrb[8].mxu1 }
0x14b8   :  { %v1074_v48 = vadd.f32 %v1070_v47, %v210_v46  ;;  %v1304_v49 = vpop.f32.mrb[9].mxu1 }
0x14ba   :  { %v1150_v50 = vmul.f32 -1.442695, %v1074_v48 }
0x14bc   :  { %1424 = vpow2.f32 %v1150_v50 }
0x14bd   :  { %1426 = vtanh.f32 %v1074_v48 }
0x14c6   :  { %v1425_v51 = vpop.eup %1424 }
0x14c7   :  { %v1079_v52 = vadd.f32 1.0, %v1425_v51  ;;  %v1427_v53 = vpop.eup %1426 }
0x14c9   :  { %1428 = vrcp.f32 %v1079_v52 }
0x14d3   :  { %v1429_v54 = vpop.eup %1428 }
0x14d4   :  { %v1082_v55 = vsel %vm223_vm3, %v1427_v53, %v1429_v54 }
0x14d5   :  { %1085 = vrot.lane.b32.xlu0 %v1082_v55, %s1534_s3  ;;  %v1083_v14 = vmul.f32 %v1082_v55, %v983_v41 }
0x1547   :  { %v1086_v56 = vpop.permute.xlu0 %1085 }
0x1548   :  { %v1088_v57 = vmul.f32 %v1086_v56, %v1082_v55 }
0x154a   :  { %1090 = vrot.lane.b32.xlu1 %v1088_v57, %s1535_s26 }
0x15bc   :  { %v1091_v5 = vpop.permute.xlu1 %1090 }
0x15bd   :  { %v1093_v58 = vadd.f32 %v1091_v5, %v1083_v14 }
0x15bf   :  { %1430 = vtanh.f32 %v1093_v58  ;;  %1107 = vst.msk [vmem:[#allocation3] sm:$0xff] %vm63_vm1, %v1093_v58 }
0x15c9   :  { %v1431_v59 = vpop.eup %1430 }
0x15ca   :  { %1096 = vrot.lane.b32.xlu0 %v1431_v59, %s1534_s3 }
0x163c   :  { %v1097_v60 = vpop.permute.xlu0 %1096 }
0x163d   :  { %v1099_v61 = vmul.f32 %v1097_v60, %v1082_v55 }
0x163f   :  { %1101 = vrot.lane.b32.xlu1 %v1099_v61, %s1534_s3 }
0x16b1   :  { %v1102_v25 = vpop.permute.xlu1 %1101 }
0x16b2   :  { %1105 = vst.msk [vmem:[#allocation11 + $0x38] sm:$0xff] %vm63_vm1, %v1102_v25  ;;  %1106 = vst.msk [vmem:[#allocation2] sm:$0xff] %vm63_vm1, %v1102_v25 }
0x16b3   :  { %1509 = shalt.err (!%p1506_p0)
}
0x16b4   :  { %s1510_s8 = scalar_lea.hbm %s1791_s4, 1024 }
0x16b5   :  { %p1511_p1 = scmp.ne.s32.totalorder %s1791_s4, %s1510_s8  ;;  %p1514_p2 = scmp.lt.u32.totalorder %s1510_s8, %s1791_s4 }
0x16b7   :  { %p1516_p3 = pnand %p1514_p2, %p1511_p1 }
0x16b9   :  { %1519 = shalt.err (!%p1516_p3)
}
0x16ba   :  { %1119 = dma.vmem_to_hbm [thread:$0]  %s1114_s30, 1024, %s1791_s4, [#allocation7], %s1528_s27, %s1528_s27, %s1529_s28  }
0x16bb   :  { %1524 = dma.done.wait [#allocation7], 1024  }
0x16bc   :  { %1525 = vsyncadd [#allocation7], 4294966272 }
0x16bd   :  { %1123 = vsyncpa [#allocation6], 1 }
0x16be   :  { %1124 = vsyncpa [#allocation9], 1 }
0x16bf   :  { %1125 = vsyncpa [#allocation7], 1 }

</bundles_post_ra>
